<compile_context>
chip_gen: v7x
topology: tpu7x:2x2x1
jax: 0.10.0
libtpu: 0.0.40
codegen_flags: <defaults>
</compile_context>

<pallas_src>
import functools

import jax
import jax.numpy as jnp
from jax.experimental import pallas as pl
from jax.experimental.pallas import tpu as pltpu


def _fused_two_linear_kernel(dl_ref, rdm_ref, wdl_ref, wrdm_ref, b_ref, o_ref):
    # dl_ref : (B, IN_dl)    wdl_ref : (IN_dl, D)
    # rdm_ref: (B, IN_rdm)   wrdm_ref: (IN_rdm, D)
    # b_ref  : (1, 2*D)  (b_dl || b_rdm)
    # o_ref  : (B, 2*D)  (dl_x || rdm_x)  -- lane-dense single store
    dl_acc = jnp.dot(dl_ref[...], wdl_ref[...],
                     preferred_element_type=jnp.float32)
    rdm_acc = jnp.dot(rdm_ref[...], wrdm_ref[...],
                      preferred_element_type=jnp.float32)
    y = jnp.concatenate([dl_acc, rdm_acc], axis=-1) + b_ref[...]
    o_ref[...] = y.astype(o_ref.dtype)


@jax.jit
def _fused_forward(dlfea, rdmfea, w_dl_t, w_rdm_t, b_cat):
    """Returns (dl_x, rdm_x) computed in one fused Pallas call.

    dlfea  : (B, IN_dl)    float32
    rdmfea : (B, IN_rdm)   float32
    w_dl_t : (IN_dl, D)    float32   (PyTorch weight, pre-transposed)
    w_rdm_t: (IN_rdm, D)   float32   (PyTorch weight, pre-transposed)
    b_cat  : (1, 2*D)      float32   (b_dl || b_rdm)
    """
    B, in_dl = dlfea.shape
    _, in_rdm = rdmfea.shape
    D = w_dl_t.shape[1]
    out_w = 2 * D

    flops = 2 * B * in_dl * D + 2 * B * in_rdm * D + B * out_w
    bytes_accessed = 4 * (dlfea.size + rdmfea.size + w_dl_t.size
                          + w_rdm_t.size + b_cat.size + B * out_w)

    out = pl.pallas_call(
        _fused_two_linear_kernel,
        out_shape=jax.ShapeDtypeStruct((B, out_w), dlfea.dtype),
        grid=(1,),
        in_specs=[
            pl.BlockSpec((B, in_dl), lambda i: (0, 0)),
            pl.BlockSpec((B, in_rdm), lambda i: (0, 0)),
            pl.BlockSpec((in_dl, D), lambda i: (0, 0)),
            pl.BlockSpec((in_rdm, D), lambda i: (0, 0)),
            pl.BlockSpec((1, out_w), lambda i: (0, 0)),
        ],
        out_specs=pl.BlockSpec((B, out_w), lambda i: (0, 0)),
        compiler_params=pltpu.CompilerParams(
            dimension_semantics=("arbitrary",)),
        cost_estimate=pl.CostEstimate(
            flops=flops, transcendentals=0, bytes_accessed=bytes_accessed),
    )(dlfea, rdmfea, w_dl_t, w_rdm_t, b_cat)

    # Split the lane-dense slab back into the two module outputs.
    return out[:, :D], out[:, D:]


class OneStageContrastDLRdmPallas:
    """JAX/Pallas equivalent of the PyTorch OneStageContrastDLRdm module."""

    def __init__(self, dlfeanum, rdmfeanum, dimp, key):
        self.dlfeanum = dlfeanum
        self.rdmfeanum = rdmfeanum
        self.dimp = dimp

        k1, k2, k3, k4 = jax.random.split(key, 4)
        # PyTorch nn.Linear default init: U(-1/sqrt(in), 1/sqrt(in)) for both
        # weight (out, in) and bias (out,). Deterministic via PRNGKey.
        bound_dl = 1.0 / (dlfeanum ** 0.5)
        bound_rdm = 1.0 / (rdmfeanum ** 0.5)
        w_dl = jax.random.uniform(
            k1, (dimp, dlfeanum), jnp.float32, -bound_dl, bound_dl)
        b_dl = jax.random.uniform(
            k2, (dimp,), jnp.float32, -bound_dl, bound_dl)
        w_rdm = jax.random.uniform(
            k3, (dimp, rdmfeanum), jnp.float32, -bound_rdm, bound_rdm)
        b_rdm = jax.random.uniform(
            k4, (dimp,), jnp.float32, -bound_rdm, bound_rdm)

        # One-time layout plumbing (done here, never per forward call):
        #   weights (out, in) -> (in, out), biases packed into one row.
        self.w_dl_t = jnp.asarray(w_dl.T)                      # (IN_dl, D)
        self.w_rdm_t = jnp.asarray(w_rdm.T)                    # (IN_rdm, D)
        self.b_cat = jnp.concatenate([b_dl, b_rdm]).reshape(1, 2 * dimp)

    def __call__(self, dlfea, rdmfea):
        return _fused_forward(dlfea, rdmfea,
                              self.w_dl_t, self.w_rdm_t, self.b_cat)


if __name__ == "__main__":
    key = jax.random.PRNGKey(0)
    k_mod, k_dl, k_rdm = jax.random.split(key, 3)

    batch = 8
    dlfeanum = 32
    rdmfeanum = 16
    dimp = 64

    model = OneStageContrastDLRdmPallas(dlfeanum, rdmfeanum, dimp, k_mod)

    dlfea = jax.random.normal(k_dl, (batch, dlfeanum), jnp.float32)
    rdmfea = jax.random.normal(k_rdm, (batch, rdmfeanum), jnp.float32)

    dl_x, rdm_x = model(dlfea, rdmfea)
    jax.block_until_ready((dl_x, rdm_x))

    # Reference check in plain JAX (same math as torch.nn.Linear).
    b_dl = model.b_cat[0, :dimp]
    b_rdm = model.b_cat[0, dimp:]
    dl_ref = dlfea @ model.w_dl_t + b_dl
    rdm_ref = rdmfea @ model.w_rdm_t + b_rdm
    assert dl_x.shape == (batch, dimp) and rdm_x.shape == (batch, dimp)
    assert jnp.allclose(dl_x, dl_ref, atol=1e-5, rtol=1e-5)
    assert jnp.allclose(rdm_x, rdm_ref, atol=1e-5, rtol=1e-5)

    print("KERNEL_OK")
</pallas_src>

<mosaic_0001>
module attributes {stable_mosaic.version = 11 : i64} {
  func.func @_fused_two_linear_kernel(%arg0: i32, %arg1: memref<8x32xf32, #tpu.memory_space<vmem>>, %arg2: memref<8x16xf32, #tpu.memory_space<vmem>>, %arg3: memref<32x64xf32, #tpu.memory_space<vmem>>, %arg4: memref<16x64xf32, #tpu.memory_space<vmem>>, %arg5: memref<1x128xf32, #tpu.memory_space<vmem>>, %arg6: memref<8x128xf32, #tpu.memory_space<vmem>>) attributes {dimension_semantics = [#tpu.dimension_semantics<arbitrary>], iteration_bounds = array<i64: 1>, scalar_prefetch = 0 : i64, scratch_operands = 0 : i64, tpu.core_type = #tpu.core_type<tc>, window_params = [{pipeline_mode = #tpu.pipeline_mode<synchronous>, transform_indices = @transform_0, window_bounds = array<i64: 8, 32>}, {pipeline_mode = #tpu.pipeline_mode<synchronous>, transform_indices = @transform_1, window_bounds = array<i64: 8, 16>}, {pipeline_mode = #tpu.pipeline_mode<synchronous>, transform_indices = @transform_2, window_bounds = array<i64: 32, 64>}, {pipeline_mode = #tpu.pipeline_mode<synchronous>, transform_indices = @transform_3, window_bounds = array<i64: 16, 64>}, {pipeline_mode = #tpu.pipeline_mode<synchronous>, transform_indices = @transform_4, window_bounds = array<i64: 1, 128>}, {pipeline_mode = #tpu.pipeline_mode<synchronous>, transform_indices = @transform_5, window_bounds = array<i64: 8, 128>}]} {
    %c0 = arith.constant 0 : index
    %c0_0 = arith.constant 0 : index
    %0 = vector.load %arg1[%c0, %c0_0] : memref<8x32xf32, #tpu.memory_space<vmem>>, vector<8x32xf32>
    %c0_1 = arith.constant 0 : index
    %c0_2 = arith.constant 0 : index
    %1 = vector.load %arg3[%c0_1, %c0_2] : memref<32x64xf32, #tpu.memory_space<vmem>>, vector<32x64xf32>
    %cst = arith.constant dense<0.000000e+00> : vector<8x64xf32>
    %2 = tpu.matmul %0, %1, %cst {dimension_numbers = #tpu.dot_dimension_numbers<[1], [0], [0], [1], [0, 0, 1, 1], [], []>} : vector<8x32xf32>, vector<32x64xf32>, vector<8x64xf32> -> vector<8x64xf32>
    %c0_3 = arith.constant 0 : index
    %c0_4 = arith.constant 0 : index
    %3 = vector.load %arg2[%c0_3, %c0_4] : memref<8x16xf32, #tpu.memory_space<vmem>>, vector<8x16xf32>
    %c0_5 = arith.constant 0 : index
    %c0_6 = arith.constant 0 : index
    %4 = vector.load %arg4[%c0_5, %c0_6] : memref<16x64xf32, #tpu.memory_space<vmem>>, vector<16x64xf32>
    %cst_7 = arith.constant dense<0.000000e+00> : vector<8x64xf32>
    %5 = tpu.matmul %3, %4, %cst_7 {dimension_numbers = #tpu.dot_dimension_numbers<[1], [0], [0], [1], [0, 0, 1, 1], [], []>} : vector<8x16xf32>, vector<16x64xf32>, vector<8x64xf32> -> vector<8x64xf32>
    %6 = tpu.concatenate %2, %5 in 1 : vector<8x64xf32>, vector<8x64xf32> -> vector<8x128xf32>
    %c0_8 = arith.constant 0 : index
    %c0_9 = arith.constant 0 : index
    %7 = vector.load %arg5[%c0_8, %c0_9] : memref<1x128xf32, #tpu.memory_space<vmem>>, vector<1x128xf32>
    %8 = vector.broadcast %7 : vector<1x128xf32> to vector<8x128xf32>
    %9 = arith.addf %6, %8 : vector<8x128xf32>
    %c0_10 = arith.constant 0 : index
    %c0_11 = arith.constant 0 : index
    %10 = vector.load %arg6[%c0_10, %c0_11] : memref<8x128xf32, #tpu.memory_space<vmem>>, vector<8x128xf32>
    tpu.vector_store %arg6[%c0_10, %c0_11], %9 {strides = array<i32>} : memref<8x128xf32, #tpu.memory_space<vmem>>, vector<8x128xf32>,
    return
  }
  func.func @transform_0(%arg0: i32) -> (i32, i32) {
    %c0_i32 = arith.constant 0 : i32
    %c0_i32_0 = arith.constant 0 : i32
    %c0_i32_1 = arith.constant 0 : i32
    return %c0_i32, %c0_i32_0 : i32, i32
  }
  func.func @transform_1(%arg0: i32) -> (i32, i32) {
    %c0_i32 = arith.constant 0 : i32
    %c0_i32_0 = arith.constant 0 : i32
    %c0_i32_1 = arith.constant 0 : i32
    return %c0_i32, %c0_i32_0 : i32, i32
  }
  func.func @transform_2(%arg0: i32) -> (i32, i32) {
    %c0_i32 = arith.constant 0 : i32
    %c0_i32_0 = arith.constant 0 : i32
    %c0_i32_1 = arith.constant 0 : i32
    return %c0_i32, %c0_i32_0 : i32, i32
  }
  func.func @transform_3(%arg0: i32) -> (i32, i32) {
    %c0_i32 = arith.constant 0 : i32
    %c0_i32_0 = arith.constant 0 : i32
    %c0_i32_1 = arith.constant 0 : i32
    return %c0_i32, %c0_i32_0 : i32, i32
  }
  func.func @transform_4(%arg0: i32) -> (i32, i32) {
    %c0_i32 = arith.constant 0 : i32
    %c0_i32_0 = arith.constant 0 : i32
    %c0_i32_1 = arith.constant 0 : i32
    return %c0_i32, %c0_i32_0 : i32, i32
  }
  func.func @transform_5(%arg0: i32) -> (i32, i32) {
    %c0_i32 = arith.constant 0 : i32
    %c0_i32_0 = arith.constant 0 : i32
    %c0_i32_1 = arith.constant 0 : i32
    return %c0_i32, %c0_i32_0 : i32, i32
  }
}

</mosaic_0001>

<bundles_post_ra>
// kernel: _fused_forward.1
= control target key start
LH: loop header
LB: loop body
LE: loop exit
PB: predicated region body
PF: predicated region fallthrough
CT: control target
= control target key end

     0   :  { %10 = vsyncpa [#allocation3], 0  ;;  %s485_s0 = inlined_call_operand.hbm [shape: f32[8,32], index: 0, kind: input, shape index: {}]   ;;  %s486_s1 = inlined_call_operand.hbm [shape: f32[8,16], index: 1, kind: input, shape index: {}]   ;;  %s487_s2 = inlined_call_operand.hbm [shape: f32[32,64], index: 2, kind: input, shape index: {}]   ;;  %s488_s3 = inlined_call_operand.hbm [shape: f32[16,64], index: 3, kind: input, shape index: {}]   ;;  %s489_s4 = inlined_call_operand.vmem [shape: f32[1,128], index: 4, kind: input, shape index: {}]   ;;  %s490_s5 = inlined_call_operand.vmem [shape: f32[8,128], index: 5, kind: output, shape index: {}]  }
   0x1   :  { %11 = vsyncpa [#allocation5], 0 }
   0x2   :  { %12 = vsyncpa [#allocation8], 0  ;;  %s391_s18 = smov [#allocation4]   ;;  %s392_s20 = smov [#allocation2]  }
   0x3   :  { %s29_s19 = sshll.u32 %s391_s18, 4  ;;  %s19_s21 = sshll.u32 %s392_s20, 4  ;;  %s30_s19 = int_to_ptr.vmem [resolvable:$true] %s29_s19  ;;  %s20_s21 = int_to_ptr.vmem [resolvable:$true] %s19_s21 }
   0x4   :  { %s297_s24 = scalar_lea.hbm %s486_s1, 128 }
   0x5   :  { %p298_p0 = scmp.ne.s32.totalorder %s486_s1, %s297_s24  ;;  %p301_p1 = scmp.lt.u32.totalorder %s297_s24, %s486_s1 }
   0x7   :  { %p303_p2 = pnand %p301_p1, %p298_p0 }
   0x9   :  { %306 = shalt.err (!%p303_p2)
}
   0xa   :  { %s307_s29 = scalar_lea.vmem %s30_s19, 128  ;;  %p312_p4 = scmp.lt.s32.totalorder %s30_s19, %s30_s19 }
   0xb   :  { %p308_p3 = scmp.ne.s32.totalorder %s30_s19, %s307_s29  ;;  %p313_p5 = scmp.lt.s32.totalorder %s307_s29, %s307_s29 }
   0xd   :  { %p314_p6 = por %p313_p5, %p312_p4 }
   0xf   :  { %p315_p7 = pnand %p314_p6, %p308_p3 }
  0x11   :  { %318 = shalt.err (!%p315_p7)
}
  0x12   :  { %32 = dma.hbm_to_vmem [thread:$0]  %s486_s1, 128, %s30_s19, [#allocation5]  }
  0x13   :  { %s319_s9 = scalar_lea.hbm %s485_s0, 128 }
  0x14   :  { %p320_p8 = scmp.ne.s32.totalorder %s485_s0, %s319_s9  ;;  %p323_p9 = scmp.lt.u32.totalorder %s319_s9, %s485_s0 }
  0x16   :  { %p325_p10 = pnand %p323_p9, %p320_p8 }
  0x18   :  { %328 = shalt.err (!%p325_p10)
}
  0x19   :  { %s329_s14 = scalar_lea.vmem %s20_s21, 128  ;;  %p334_p12 = scmp.lt.s32.totalorder %s20_s21, %s20_s21 }
  0x1a   :  { %p330_p11 = scmp.ne.s32.totalorder %s20_s21, %s329_s14  ;;  %p335_p13 = scmp.lt.s32.totalorder %s329_s14, %s329_s14 }
  0x1c   :  { %p336_p0 = por %p335_p13, %p334_p12 }
  0x1e   :  { %p337_p1 = pnand %p336_p0, %p330_p11 }
  0x20   :  { %340 = shalt.err (!%p337_p1)
}
  0x21   :  { %22 = dma.hbm_to_vmem [thread:$0]  %s485_s0, 128, %s20_s21, [#allocation3]  }
  0x22   :  { %s393_s16 = smov [#allocation6]   ;;  %s341_s20 = scalar_lea.hbm %s487_s2, 512 }
  0x23   :  { %s38_s17 = sshll.u32 %s393_s16, 4  ;;  %p342_p2 = scmp.ne.s32.totalorder %s487_s2, %s341_s20  ;;  %s39_s17 = int_to_ptr.vmem [resolvable:$true] %s38_s17 }
  0x24   :  { %p345_p3 = scmp.lt.u32.totalorder %s341_s20, %s487_s2 }
  0x26   :  { %p347_p4 = pnand %p345_p3, %p342_p2 }
  0x28   :  { %350 = shalt.err (!%p347_p4)
}
  0x29   :  { %s351_s26 = scalar_lea.vmem %s39_s17, 512  ;;  %p356_p6 = scmp.lt.s32.totalorder %s39_s17, %s39_s17 }
  0x2a   :  { %p352_p5 = scmp.ne.s32.totalorder %s39_s17, %s351_s26  ;;  %p357_p7 = scmp.lt.s32.totalorder %s351_s26, %s351_s26 }
  0x2c   :  { %p358_p8 = por %p357_p7, %p356_p6 }
  0x2e   :  { %p359_p9 = pnand %p358_p8, %p352_p5 }
  0x30   :  { %362 = shalt.err (!%p359_p9)
}
  0x31   :  { %s394_s0 = smov 128   ;;  %s395_s21 = smov 8  }
  0x32   :  { %44 = dma.hbm_to_vmem [thread:$0]  %s487_s2, 512, %s39_s17, [#allocation5], %s394_s0, %s394_s0, %s395_s21  }
  0x33   :  { %s396_s29 = smov [#allocation7]   ;;  %s363_s8 = scalar_lea.hbm %s488_s3, 256 }
  0x34   :  { %s50_s30 = sshll.u32 %s396_s29, 4  ;;  %p364_p10 = scmp.ne.s32.totalorder %s488_s3, %s363_s8  ;;  %s51_s30 = int_to_ptr.vmem [resolvable:$true] %s50_s30 }
  0x35   :  { %p367_p11 = scmp.lt.u32.totalorder %s363_s8, %s488_s3 }
  0x37   :  { %p369_p12 = pnand %p367_p11, %p364_p10 }
  0x39   :  { %372 = shalt.err (!%p369_p12)
}
  0x3a   :  { %s373_s13 = scalar_lea.vmem %s51_s30, 256  ;;  %p378_p0 = scmp.lt.s32.totalorder %s51_s30, %s51_s30 }
  0x3b   :  { %p374_p13 = scmp.ne.s32.totalorder %s51_s30, %s373_s13  ;;  %p379_p1 = scmp.lt.s32.totalorder %s373_s13, %s373_s13 }
  0x3d   :  { %p380_p2 = por %p379_p1, %p378_p0 }
  0x3f   :  { %p381_p3 = pnand %p380_p2, %p374_p13 }
  0x41   :  { %384 = shalt.err (!%p381_p3)
}
  0x42   :  { %56 = dma.hbm_to_vmem [thread:$0]  %s488_s3, 256, %s51_s30, [#allocation8], %s394_s0, %s394_s0, %s395_s21  }
  0x43   :  { %385 = dma.done.wait [#allocation3], 128  }
  0x44   :  { %386 = vsyncadd [#allocation3], 4294967168 }
  0x45   :  { %387 = dma.done.wait [#allocation5], 640  }
  0x46   :  { %388 = vsyncadd [#allocation5], 4294966656 }
  0x47   :  { %389 = dma.done.wait [#allocation8], 256  }
  0x48   :  { %390 = vsyncadd [#allocation8], 4294967040  ;;  %v397_v0 = vmov 0.0|0.0   ;;  %vm398_vm0 = vmmov 0   ;;  %v399_v1 = vmov 0.0   ;;  %v151_v2 = vld [vmem:[#allocation7] sm:$0xff] }
  0x49   :  { %284 = vmatprep.subr.bf16.mxu1 %v397_v0  ;;  %275 = vmatprep.mubr.msk.f32.mxu1 %vm398_vm0, %v399_v1  ;;  %v152_v3 = vld [vmem:[#allocation7 + $0x8] sm:$0xff]  ;;  %v72_v5 = vld [vmem:[#allocation6] sm:$0xff]  ;;  %v74_v7 = vld [vmem:[#allocation6 + $0x10] sm:$0xff]  ;;  %vm153_vm1 = vcmask 130048   ;;  %vm76_vm2 = vcmask 261120   ;;  %s400_s3 = smov 64  }
  0x4a   :  { %278 = vmatprep.subr.bf16.mxu0 %v397_v0  ;;  %268 = vmatprep.mubr.msk.f32.mxu0 %vm398_vm0, %v399_v1  ;;  %v285_v4 = vpack.c.bf16 %v152_v3, %v151_v2  ;;  %v73_v6 = vld [vmem:[#allocation6 + $0x8] sm:$0xff]  ;;  %v75_v9 = vld [vmem:[#allocation6 + $0x18] sm:$0xff]  ;;  %v71_v12 = vld [vmem:[#allocation2] sm:$0xff]  ;;  %vm231_vm3 = vcmask 523264  }
  0x4b   :  { %v279_v8 = vpack.c.bf16 %v73_v6, %v72_v5  ;;  %v150_v10 = vld [vmem:[#allocation4] sm:$0xff]  ;;  %v282_v11 = vpack.c.bf16 %v75_v9, %v74_v7  ;;  %v251_v17 = vld [vmem:[%s489_s4] ss:$0 sm:$0xff] }
  0x4c   :  { %286 = vmatpush3.bf16.msra.mxu1 %v285_v4 }
  0x4d   :  { %280 = vmatpush3.bf16.msra.mxu0 %v279_v8 }
  0x4e   :  { %281 = vmatprep.subr.bf16.mxu0 %v397_v0 }
  0x4f   :  { %276 = vmatmul.mubr.msk.f32.vlgmr.msra.gmra.mrb[0].mxu1 %vm153_vm1, %v150_v10 }
  0x51   :  { %283 = vmatpush3.bf16.msra.mxu0 %v282_v11 }
  0x54   :  { %269 = vmatmul.mubr.msk.f32.vlgmr.msra.gmra.mrb[0].mxu0 %vm76_vm2, %v71_v12 }
 0x122   :  { %v223_v13 = vpop.f32.mrb[0].mxu1 }
 0x123   :  { %v277_v14 = vpop.f32.mrb[1].mxu1  ;;  %228 = vrot.lane.b32.xlu0 %v223_v13, %s400_s3 }
 0x127   :  { %v146_v15 = vpop.f32.mrb[0].mxu0 }
 0x128   :  { %v270_v16 = vpop.f32.mrb[1].mxu0 }
 0x195   :  { %v229_v18 = vpop.permute.xlu0 %228 }
 0x196   :  { %v232_v19 = vsel %vm231_vm3, %v146_v15, %v229_v18 }
 0x197   :  { %v240_v20 = vadd.f32 %v251_v17, %v232_v19 }
 0x199   :  { %241 = vst [vmem:[%s490_s5] sm:$0xff] %v240_v20 }
 0x19a   :  { %246 = vsyncpa [#allocation3], 1 }
 0x19b   :  { %247 = vsyncpa [#allocation5], 1 }
 0x19c   :  { %248 = vsyncpa [#allocation8], 1 }

</bundles_post_ra>
